<compile_context>
chip_gen: v7x
topology: tpu7x:2x2x1
jax: 0.10.0
libtpu: 0.0.40
codegen_flags: <defaults>
</compile_context>

<pallas_src>
import functools

import jax
import jax.numpy as jnp
from jax.experimental import pallas as pl
from jax.experimental.pallas import tpu as pltpu


def _round_up(x, m):
    return ((x + m - 1) // m) * m


def _qtable_kernel(state_ref, action_ref, w_ref, out_ref, *, pack, actions, mxu_dtype):
    # state:  [T, pack*F]   (pack batch rows concatenated along lanes)
    # action: [T, pack*A]
    # w:      [pack*F, pack*A]  block-diagonal (pack copies of W)
    # out:    [T, pack]      out[t, p] = state_row @ W @ action_row for batch row t*pack+p
    s = state_ref[...]
    w = w_ref[...]
    if mxu_dtype is not None:
        tgt = jnp.dtype(mxu_dtype)
        if s.dtype != tgt:
            s = s.astype(tgt)      # in-kernel cast: single-pass MXU pushes, no extra HBM traffic
        if w.dtype != tgt:
            w = w.astype(tgt)
    # One MXU matmul per 8 packed rows (covers pack*8 batch rows), f32 accumulation.
    sw = jnp.dot(s, w, preferred_element_type=jnp.float32)          # [T, pack*A]
    prod = sw * action_ref[...].astype(jnp.float32)                 # f32 VPU math
    # Reduce each group of `actions` lanes -> one scalar per packed batch row.
    cols = [
        jnp.sum(prod[:, p * actions:(p + 1) * actions], axis=1, keepdims=True)
        for p in range(pack)
    ]
    out_ref[...] = cols[0] if pack == 1 else jnp.concatenate(cols, axis=1)


def qtable_forward(state, action, weights, *, tile=None, mxu_dtype=jnp.bfloat16):
    """QTable forward: out[b] = state[b] @ weights @ action[b].  Returns [B] float32.

    mxu_dtype: dtype the dot operands are cast to *inside the kernel*
               (default bf16 -> single-pass MXU pushes; pass jnp.float32 for
               the exact path, or None to use the input dtype as-is).
    """
    B, F = state.shape
    Bb, A = action.shape
    assert Bb == B and weights.shape == (F, A)

    # --- batch packing factor: fill the 128-wide MXU contraction dim.
    pack = min(128 // max(F, 1), 128 // max(A, 1))
    pack = max(1, pack)                      # F or A > 128 -> plain (unpacked) path
    Kp, Np = pack * F, pack * A

    # --- tile / grid selection over packed rows (VMEM-aware, lane-padded accounting).
    bp_raw = -(-B // pack)                                   # packed rows needed
    row_bytes = jnp.dtype(state.dtype).itemsize * _round_up(Kp, 128) \
        + jnp.dtype(action.dtype).itemsize * _round_up(Np, 128)
    vmem_cap = max(8, (((6 << 20) // (2 * row_bytes)) // 8) * 8)   # ~6 MiB double-buffered budget
    if tile is None:
        bp8 = _round_up(max(bp_raw, 8), 8)
        if bp8 <= min(1024, vmem_cap):
            tile = bp8                       # single step: per-step overhead dominates small work
        else:
            cap = min(2048, vmem_cap)
            steps_t = max(4, -(-bp8 // cap))  # >=4 steps keeps both v7x cores double-buffered
            tile = _round_up(-(-bp8 // steps_t), 8)
    tile = max(8, _round_up(int(tile), 8))
    steps = max(1, -(-bp_raw // tile))
    bp = steps * tile                        # padded packed-row count
    b_pad = bp * pack                        # padded batch

    # --- wrapper-side packing (reshapes + zero padding; zero rows contribute 0).
    st, ac = state, action
    if b_pad != B:
        st = jnp.pad(st, ((0, b_pad - B), (0, 0)))
        ac = jnp.pad(ac, ((0, b_pad - B), (0, 0)))
    st_p = st.reshape(bp, Kp)
    ac_p = ac.reshape(bp, Np)
    # Block-diagonal weights, built once (tiny: <= 128*128*4 B).
    w_bd = jnp.kron(jnp.eye(pack, dtype=weights.dtype), weights)    # [Kp, Np]

    kernel = functools.partial(_qtable_kernel, pack=pack, actions=A, mxu_dtype=mxu_dtype)

    itemsize = jnp.dtype(state.dtype).itemsize
    cost = pl.CostEstimate(
        flops=int(2 * b_pad * F * A + 2 * b_pad * A),
        transcendentals=0,
        bytes_accessed=int(itemsize * (b_pad * F + b_pad * A) + 4 * (Kp * Np + bp * pack)),
    )

    out_packed = pl.pallas_call(
        kernel,
        out_shape=jax.ShapeDtypeStruct((bp, pack), jnp.float32),
        grid_spec=pltpu.PrefetchScalarGridSpec(
            num_scalar_prefetch=0,
            grid=(steps,),
            in_specs=[
                pl.BlockSpec((tile, Kp), lambda i: (i, 0)),   # packed state tile (streamed)
                pl.BlockSpec((tile, Np), lambda i: (i, 0)),   # packed action tile (streamed)
                pl.BlockSpec((Kp, Np), lambda i: (0, 0)),     # block-diag weights (VMEM-resident)
            ],
            out_specs=pl.BlockSpec((tile, pack), lambda i: (i, 0)),
        ),
        compiler_params=pltpu.CompilerParams(
            dimension_semantics=("parallel",),  # independent batch tiles -> megacore-shardable
        ),
        cost_estimate=cost,
    )(st_p, ac_p, w_bd)

    return out_packed.reshape(b_pad)[:B]


def _reference_forward(state, action, weights):
    # Mirrors the torch code exactly: outer product, scale by weights, sum over [1, 2].
    context = state[:, :, None] * action[:, None, :]      # [B, F, A]
    context = context * weights[None, :, :]
    return jnp.sum(context, axis=(1, 2))


if __name__ == "__main__":
    # Small shapes consistent with the module: batch=128, features=32, actions=16.
    B, FEATURES, ACTIONS = 128, 32, 16

    key = jax.random.PRNGKey(0)
    ks, ka, kw = jax.random.split(key, 3)
    state = jax.random.uniform(ks, (B, FEATURES), dtype=jnp.float32)
    action = jax.random.uniform(ka, (B, ACTIONS), dtype=jnp.float32)
    weights = jax.random.uniform(kw, (FEATURES, ACTIONS), dtype=jnp.float32)  # torch.rand init

    ref = _reference_forward(state, action, weights)

    # Exact path: f32 operands on the MXU (multi-pass, for bit-faithful checking).
    out_f32 = jax.block_until_ready(qtable_forward(state, action, weights, mxu_dtype=jnp.float32))
    assert out_f32.shape == (B,)
    assert jnp.allclose(out_f32, ref, rtol=1e-4, atol=1e-3), "mismatch vs reference (f32 path)"

    # Default fast path: bf16 MXU operands (single-pass pushes), f32 accumulation.
    out_bf16 = jax.block_until_ready(qtable_forward(state, action, weights))
    assert out_bf16.shape == (B,)
    assert jnp.allclose(out_bf16, ref, rtol=2e-2, atol=0.5), "mismatch vs reference (bf16 MXU path)"

    # Awkward (non-multiple-of-pack) batch exercises the zero-padding path.
    B2 = 130
    s2 = jax.random.uniform(ks, (B2, FEATURES), dtype=jnp.float32)
    a2 = jax.random.uniform(ka, (B2, ACTIONS), dtype=jnp.float32)
    ref2 = _reference_forward(s2, a2, weights)
    out2 = jax.block_until_ready(qtable_forward(s2, a2, weights, mxu_dtype=jnp.float32))
    assert out2.shape == (B2,)
    assert jnp.allclose(out2, ref2, rtol=1e-4, atol=1e-3), "mismatch vs reference (padded batch)"

    print("KERNEL_OK")
</pallas_src>

<mosaic_0001>
module attributes {stable_mosaic.version = 11 : i64} {
  func.func @_qtable_kernel(%arg0: i32, %arg1: memref<32x128xf32, #tpu.memory_space<vmem>>, %arg2: memref<32x64xf32, #tpu.memory_space<vmem>>, %arg3: memref<128x64xf32, #tpu.memory_space<vmem>>, %arg4: memref<32x4xf32, #tpu.memory_space<vmem>>) attributes {dimension_semantics = [#tpu.dimension_semantics<parallel>], iteration_bounds = array<i64: 1>, scalar_prefetch = 0 : i64, scratch_operands = 0 : i64, tpu.core_type = #tpu.core_type<tc>, window_params = [{transform_indices = @transform_0, window_bounds = array<i64: 32, 128>}, {transform_indices = @transform_1, window_bounds = array<i64: 32, 64>}, {pipeline_mode = #tpu.pipeline_mode<synchronous>, transform_indices = @transform_2, window_bounds = array<i64: 128, 64>}, {transform_indices = @transform_3, window_bounds = array<i64: 32, 4>}]} {
    %c0 = arith.constant 0 : index
    %c0_0 = arith.constant 0 : index
    %0 = vector.load %arg1[%c0, %c0_0] : memref<32x128xf32, #tpu.memory_space<vmem>>, vector<32x128xf32>
    %c0_1 = arith.constant 0 : index
    %c0_2 = arith.constant 0 : index
    %1 = vector.load %arg3[%c0_1, %c0_2] : memref<128x64xf32, #tpu.memory_space<vmem>>, vector<128x64xf32>
    %cst = arith.constant dense<0.000000e+00> : vector<32x64xf32>
    %2 = tpu.matmul %0, %1, %cst {dimension_numbers = #tpu.dot_dimension_numbers<[1], [0], [0], [1], [0, 0, 1, 1], [], []>} : vector<32x128xf32>, vector<128x64xf32>, vector<32x64xf32> -> vector<32x64xf32>
    %c0_3 = arith.constant 0 : index
    %c0_4 = arith.constant 0 : index
    %3 = vector.load %arg2[%c0_3, %c0_4] : memref<32x64xf32, #tpu.memory_space<vmem>>, vector<32x64xf32>
    %4 = arith.mulf %2, %3 : vector<32x64xf32>
    %5 = vector.extract_strided_slice %4 {offsets = [0, 0], sizes = [32, 16], strides = [1, 1]} : vector<32x64xf32> to vector<32x16xf32>
    %cst_5 = arith.constant dense<0.000000e+00> : vector<32xf32>
    %6 = vector.multi_reduction <add>, %5, %cst_5 [1] : vector<32x16xf32> to vector<32xf32>
    %7 = vector.shape_cast %6 : vector<32xf32> to vector<32x1xf32>
    %8 = vector.extract_strided_slice %4 {offsets = [0, 16], sizes = [32, 16], strides = [1, 1]} : vector<32x64xf32> to vector<32x16xf32>
    %cst_6 = arith.constant dense<0.000000e+00> : vector<32xf32>
    %9 = vector.multi_reduction <add>, %8, %cst_6 [1] : vector<32x16xf32> to vector<32xf32>
    %10 = vector.shape_cast %9 : vector<32xf32> to vector<32x1xf32>
    %11 = vector.extract_strided_slice %4 {offsets = [0, 32], sizes = [32, 16], strides = [1, 1]} : vector<32x64xf32> to vector<32x16xf32>
    %cst_7 = arith.constant dense<0.000000e+00> : vector<32xf32>
    %12 = vector.multi_reduction <add>, %11, %cst_7 [1] : vector<32x16xf32> to vector<32xf32>
    %13 = vector.shape_cast %12 : vector<32xf32> to vector<32x1xf32>
    %14 = vector.extract_strided_slice %4 {offsets = [0, 48], sizes = [32, 16], strides = [1, 1]} : vector<32x64xf32> to vector<32x16xf32>
    %cst_8 = arith.constant dense<0.000000e+00> : vector<32xf32>
    %15 = vector.multi_reduction <add>, %14, %cst_8 [1] : vector<32x16xf32> to vector<32xf32>
    %16 = vector.shape_cast %15 : vector<32xf32> to vector<32x1xf32>
    %17 = tpu.concatenate %7, %10, %13, %16 in 1 : vector<32x1xf32>, vector<32x1xf32>, vector<32x1xf32>, vector<32x1xf32> -> vector<32x4xf32>
    %c0_9 = arith.constant 0 : index
    %c0_10 = arith.constant 0 : index
    %18 = vector.load %arg4[%c0_9, %c0_10] : memref<32x4xf32, #tpu.memory_space<vmem>>, vector<32x4xf32>
    tpu.vector_store %arg4[%c0_9, %c0_10], %17 {strides = array<i32>} : memref<32x4xf32, #tpu.memory_space<vmem>>, vector<32x4xf32>,
    return
  }
  func.func @transform_0(%arg0: i32) -> (i32, i32) {
    %c0_i32 = arith.constant 0 : i32
    %c0_i32_0 = arith.constant 0 : i32
    return %arg0, %c0_i32 : i32, i32
  }
  func.func @transform_1(%arg0: i32) -> (i32, i32) {
    %c0_i32 = arith.constant 0 : i32
    %c0_i32_0 = arith.constant 0 : i32
    return %arg0, %c0_i32 : i32, i32
  }
  func.func @transform_2(%arg0: i32) -> (i32, i32) {
    %c0_i32 = arith.constant 0 : i32
    %c0_i32_0 = arith.constant 0 : i32
    %c0_i32_1 = arith.constant 0 : i32
    return %c0_i32, %c0_i32_0 : i32, i32
  }
  func.func @transform_3(%arg0: i32) -> (i32, i32) {
    %c0_i32 = arith.constant 0 : i32
    %c0_i32_0 = arith.constant 0 : i32
    return %arg0, %c0_i32 : i32, i32
  }
}

</mosaic_0001>

<bundles_post_ra>
// kernel: tpu_custom_call.1
= control target key start
LH: loop header
LB: loop body
LE: loop exit
PB: predicated region body
PF: predicated region fallthrough
CT: control target
= control target key end

     0   :  { %s350_s30 = smov 96   ;;  %s351_s6 = smov 80   ;;  %vm127_vm0 = vcmask 130048   ;;  %vm216_vm1 = vcmask 7168   ;;  %vm221_vm2 = vcmask 15360   ;;  %vm226_vm3 = vcmask 23552   ;;  %s488_s2 = inlined_call_operand.vmem [shape: f32[128,64], index: 2, kind: input, shape index: {}]   ;;  %s489_s0 = inlined_call_operand.vmem [shape: f32[32,128], index: 0, kind: input, shape index: {}]   ;;  %s490_s1 = inlined_call_operand.vmem [shape: f32[32,64], index: 1, kind: input, shape index: {}]   ;;  %s491_s3 = inlined_call_operand.vmem [shape: f32[32,4], index: 3, kind: output, shape index: {}]  }
   0x1   :  { %v18_v0 = vld [vmem:[%s488_s2] sm:$0xff]  ;;  %v19_v1 = vld [vmem:[%s488_s2 + $0x8] sm:$0xff]  ;;  %v20_v2 = vld [vmem:[%s488_s2 + $0x10] sm:$0xff]  ;;  %vm231_vm4 = vcmask 31744  }
   0x2   :  { %v298_v3 = vpack.c.bf16 %v19_v1, %v18_v0  ;;  %v21_v4 = vld [vmem:[%s488_s2 + $0x18] sm:$0xff]  ;;  %v22_v6 = vld [vmem:[%s488_s2 + $0x20] sm:$0xff]  ;;  %v23_v7 = vld [vmem:[%s488_s2 + $0x28] sm:$0xff] }
   0x3   :  { %v302_v5 = vpack.c.bf16 %v21_v4, %v20_v2  ;;  %v306_v8 = vpack.c.bf16 %v23_v7, %v22_v6  ;;  %v14_v9 = vld [vmem:[%s489_s0] sm:$0xff]  ;;  %v16_v10 = vld [vmem:[%s489_s0 + $0x10] sm:$0xff]  ;;  %v25_v12 = vld [vmem:[%s488_s2 + $0x38] sm:$0xff] }
   0x4   :  { %299 = vmatprep.subr.bf16.mxu0 %v298_v3  ;;  %330 = vmatprep.subr.bf16.mxu1 %v298_v3  ;;  %v24_v11 = vld [vmem:[%s488_s2 + $0x30] sm:$0xff]  ;;  %v26_v14 = vld [vmem:[%s488_s2 + $0x40] sm:$0xff]  ;;  %v27_v15 = vld [vmem:[%s488_s2 + $0x48] sm:$0xff] }
   0x5   :  { %301 = vmatpush3.bf16.msra.mxu0 %v298_v3  ;;  %338 = vmatpush3.bf16.msra.mxu1 %v298_v3  ;;  %v310_v13 = vpack.c.bf16 %v25_v12, %v24_v11  ;;  %v314_v16 = vpack.c.bf16 %v27_v15, %v26_v14  ;;  %v28_v17 = vld [vmem:[%s488_s2 + $0x50] sm:$0xff]  ;;  %v29_v18 = vld [vmem:[%s488_s2 + $0x58] sm:$0xff]  ;;  %v30_v20 = vld [vmem:[%s488_s2 + $0x60] sm:$0xff] }
   0x6   :  { %303 = vmatprep.subr.bf16.mxu0 %v302_v5  ;;  %331 = vmatprep.subr.bf16.mxu1 %v302_v5  ;;  %v318_v19 = vpack.c.bf16 %v29_v18, %v28_v17  ;;  %v31_v21 = vld [vmem:[%s488_s2 + $0x68] sm:$0xff]  ;;  %v32_v23 = vld [vmem:[%s488_s2 + $0x70] sm:$0xff]  ;;  %v33_v24 = vld [vmem:[%s488_s2 + $0x78] sm:$0xff] }
   0x7   :  { %292 = vmatprep.mubr.f32.mxu0 %v14_v9  ;;  %295 = vmatprep.mubr.f32.mxu1 %v16_v10  ;;  %v322_v22 = vpack.c.bf16 %v31_v21, %v30_v20  ;;  %v326_v25 = vpack.c.bf16 %v33_v24, %v32_v23  ;;  %v15_v26 = vld [vmem:[%s489_s0 + $0x8] sm:$0xff]  ;;  %v17_v27 = vld [vmem:[%s489_s0 + $0x18] sm:$0xff]  ;;  %v119_v32 = vld [vmem:[%s490_s1] sm:$0xff]  ;;  %s349_s0 = smov 112  }
   0x8   :  { %v120_v28 = vld [vmem:[%s490_s1 + $0x8] sm:$0xff]  ;;  %v122_v29 = vld [vmem:[%s490_s1 + $0x18] sm:$0xff]  ;;  %v121_v38 = vld [vmem:[%s490_s1 + $0x10] sm:$0xff] }
   0x9   :  { %305 = vmatpush3.bf16.msra.mxu0 %v302_v5  ;;  %339 = vmatpush3.bf16.msra.mxu1 %v302_v5 }
   0xa   :  { %307 = vmatprep.subr.bf16.mxu0 %v306_v8  ;;  %332 = vmatprep.subr.bf16.mxu1 %v306_v8 }
   0xd   :  { %309 = vmatpush3.bf16.msra.mxu0 %v306_v8  ;;  %340 = vmatpush3.bf16.msra.mxu1 %v306_v8 }
   0xe   :  { %311 = vmatprep.subr.bf16.mxu0 %v310_v13  ;;  %333 = vmatprep.subr.bf16.mxu1 %v310_v13 }
  0x11   :  { %313 = vmatpush3.bf16.msra.mxu0 %v310_v13  ;;  %341 = vmatpush3.bf16.msra.mxu1 %v310_v13 }
  0x12   :  { %315 = vmatprep.subr.bf16.mxu0 %v314_v16  ;;  %334 = vmatprep.subr.bf16.mxu1 %v314_v16 }
  0x15   :  { %317 = vmatpush3.bf16.msra.mxu0 %v314_v16  ;;  %342 = vmatpush3.bf16.msra.mxu1 %v314_v16 }
  0x16   :  { %319 = vmatprep.subr.bf16.mxu0 %v318_v19  ;;  %335 = vmatprep.subr.bf16.mxu1 %v318_v19 }
  0x19   :  { %321 = vmatpush3.bf16.msra.mxu0 %v318_v19  ;;  %343 = vmatpush3.bf16.msra.mxu1 %v318_v19 }
  0x1a   :  { %323 = vmatprep.subr.bf16.mxu0 %v322_v22  ;;  %336 = vmatprep.subr.bf16.mxu1 %v322_v22 }
  0x1d   :  { %325 = vmatpush3.bf16.msra.mxu0 %v322_v22  ;;  %344 = vmatpush3.bf16.msra.mxu1 %v322_v22 }
  0x1e   :  { %327 = vmatprep.subr.bf16.mxu0 %v326_v25  ;;  %337 = vmatprep.subr.bf16.mxu1 %v326_v25 }
  0x21   :  { %329 = vmatpush3.bf16.msra.mxu0 %v326_v25  ;;  %345 = vmatpush3.bf16.msra.mxu1 %v326_v25 }
  0x24   :  { %293 = vmatmul.mubr.f32.vlgmr.msra.gmra.mrb[0].mxu0 %v15_v26  ;;  %296 = vmatmul.mubr.f32.vlgmr.msra.gmra.mrb[0].mxu1 %v17_v27 }
  0xf7   :  { %v294_v30 = vpop.f32.mrb[0].mxu0  ;;  %v297_v31 = vpop.f32.mrb[0].mxu1 }
  0xf8   :  { %v124_v33 = vmul.f32 %v294_v30, %v120_v28  ;;  %v126_v34 = vmul.f32 %v297_v31, %v122_v29  ;;  %v110_v35 = vpop.f32.mrb[1].mxu1  ;;  %v100_v36 = vpop.f32.mrb[1].mxu0 }
  0xf9   :  { %v123_v37 = vmul.f32 %v119_v32, %v100_v36  ;;  %v125_v39 = vmul.f32 %v121_v38, %v110_v35 }
  0xfa   :  { %150 = vrot.lane.b32.xlu1 %v126_v34, %s349_s0  ;;  %146 = vrot.lane.b32.xlu0 %v124_v33, %s349_s0  ;;  %v137_v40 = vsel %vm127_vm0, %v126_v34, 0.0  ;;  %v131_v42 = vsel %vm127_vm0, %v124_v33, 0.0 }
  0xfb   :  { %v128_v41 = vsel %vm127_vm0, %v123_v37, 0.0  ;;  %v134_v43 = vsel %vm127_vm0, %v125_v39, 0.0 }
  0xfe   :  { %170 = vrot.lane.b32.xlu1 %v124_v33, %s350_s30  ;;  %144 = vrot.lane.b32.xlu0 %v123_v37, %s349_s0 }
 0x102   :  { %174 = vrot.lane.b32.xlu1 %v126_v34, %s350_s30  ;;  %168 = vrot.lane.b32.xlu0 %v123_v37, %s350_s30 }
 0x106   :  { %194 = vrot.lane.b32.xlu1 %v124_v33, %s351_s6  ;;  %172 = vrot.lane.b32.xlu0 %v125_v39, %s350_s30 }
 0x10a   :  { %148 = vrot.lane.b32.xlu1 %v125_v39, %s349_s0  ;;  %192 = vrot.lane.b32.xlu0 %v123_v37, %s351_s6 }
 0x10e   :  { %198 = vrot.lane.b32.xlu1 %v126_v34, %s351_s6  ;;  %196 = vrot.lane.b32.xlu0 %v125_v39, %s351_s6 }
 0x12d   :  { %138 = vadd.xlane.f32.xlu0 %v137_v40 }
 0x131   :  { %129 = vadd.xlane.f32.xlu0 %v128_v41 }
 0x132   :  { %132 = vadd.xlane.f32.xlu1 %v131_v42 }
 0x135   :  { %135 = vadd.xlane.f32.xlu0 %v134_v43 }
 0x16c   :  { %v151_v44 = vpop.permute.xlu1 %150  ;;  %v147_v45 = vpop.permute.xlu0 %146 }
 0x16d   :  { %v159_v46 = vsel %vm127_vm0, %v147_v45, 0.0  ;;  %v165_v50 = vsel %vm127_vm0, %v151_v44, 0.0 }
 0x16e   :  { %160 = vadd.xlane.f32.xlu0 %v159_v46 }
 0x170   :  { %v171_v47 = vpop.permute.xlu1 %170  ;;  %v145_v48 = vpop.permute.xlu0 %144 }
 0x171   :  { %v156_v49 = vsel %vm127_vm0, %v145_v48, 0.0  ;;  %v183_v52 = vsel %vm127_vm0, %v171_v47, 0.0 }
 0x172   :  { %157 = vadd.xlane.f32.xlu1 %v156_v49  ;;  %166 = vadd.xlane.f32.xlu0 %v165_v50 }
 0x174   :  { %v175_v51 = vpop.permute.xlu1 %174  ;;  %v169_v53 = vpop.permute.xlu0 %168 }
 0x175   :  { %v189_v55 = vsel %vm127_vm0, %v175_v51, 0.0  ;;  %v180_v61 = vsel %vm127_vm0, %v169_v53, 0.0 }
 0x176   :  { %184 = vadd.xlane.f32.xlu0 %v183_v52 }
 0x178   :  { %v195_v54 = vpop.permute.xlu1 %194  ;;  %v173_v59 = vpop.permute.xlu0 %172 }
 0x179   :  { %v207_v58 = vsel %vm127_vm0, %v195_v54, 0.0  ;;  %v186_v0 = vsel %vm127_vm0, %v173_v59, 0.0 }
 0x17a   :  { %190 = vadd.xlane.f32.xlu0 %v189_v55 }
 0x17c   :  { %v149_v56 = vpop.permute.xlu1 %148  ;;  %v193_v63 = vpop.permute.xlu0 %192 }
 0x17d   :  { %v162_v57 = vsel %vm127_vm0, %v149_v56, 0.0  ;;  %v204_v1 = vsel %vm127_vm0, %v193_v63, 0.0 }
 0x17e   :  { %163 = vadd.xlane.f32.xlu1 %v162_v57  ;;  %208 = vadd.xlane.f32.xlu0 %v207_v58 }
 0x180   :  { %v199_v60 = vpop.permute.xlu1 %198  ;;  %v197_v2 = vpop.permute.xlu0 %196 }
 0x181   :  { %v213_v62 = vsel %vm127_vm0, %v199_v60, 0.0  ;;  %v210_v3 = vsel %vm127_vm0, %v197_v2, 0.0 }
 0x182   :  { %181 = vadd.xlane.f32.xlu1 %v180_v61  ;;  %214 = vadd.xlane.f32.xlu0 %v213_v62 }
 0x186   :  { %187 = vadd.xlane.f32.xlu1 %v186_v0 }
 0x18a   :  { %205 = vadd.xlane.f32.xlu1 %v204_v1 }
 0x18e   :  { %211 = vadd.xlane.f32.xlu1 %v210_v3 }
 0x1ba   :  { %v139_v4 = vpop.xlane.xlu0 %138 }
 0x1be   :  { %v130_v5 = vpop.xlane.xlu0 %129 }
 0x1bf   :  { %v133_v9 = vpop.xlane.xlu1 %132 }
 0x1c2   :  { %v136_v6 = vpop.xlane.xlu0 %135 }
 0x1fb   :  { %v161_v7 = vpop.xlane.xlu0 %160 }
 0x1fc   :  { %v218_v13 = vsel %vm216_vm1, %v133_v9, %v161_v7 }
 0x1ff   :  { %v167_v8 = vpop.xlane.xlu0 %166  ;;  %v158_v11 = vpop.xlane.xlu1 %157 }
 0x200   :  { %v220_v18 = vsel %vm216_vm1, %v139_v4, %v167_v8  ;;  %v217_v24 = vsel %vm216_vm1, %v130_v5, %v158_v11 }
 0x203   :  { %v185_v10 = vpop.xlane.xlu0 %184 }
 0x204   :  { %v223_v14 = vsel %vm221_vm2, %v218_v13, %v185_v10 }
 0x207   :  { %v191_v12 = vpop.xlane.xlu0 %190 }
 0x208   :  { %v225_v19 = vsel %vm221_vm2, %v220_v18, %v191_v12 }
 0x20b   :  { %v164_v15 = vpop.xlane.xlu1 %163  ;;  %v209_v16 = vpop.xlane.xlu0 %208 }
 0x20c   :  { %v228_v17 = vsel %vm226_vm3, %v223_v14, %v209_v16  ;;  %v219_v28 = vsel %vm216_vm1, %v136_v6, %v164_v15 }
 0x20d   :  { %233 = vst.msk [vmem:[%s491_s3 + $0x8] sm:$0xff] %vm231_vm4, %v228_v17 }
 0x20f   :  { %v182_v20 = vpop.xlane.xlu1 %181  ;;  %v215_v21 = vpop.xlane.xlu0 %214 }
 0x210   :  { %v230_v22 = vsel %vm226_vm3, %v225_v19, %v215_v21  ;;  %v222_v25 = vsel %vm221_vm2, %v217_v24, %v182_v20 }
 0x211   :  { %235 = vst.msk [vmem:[%s491_s3 + $0x18] sm:$0xff] %vm231_vm4, %v230_v22 }
 0x213   :  { %v188_v23 = vpop.xlane.xlu1 %187 }
 0x214   :  { %v224_v29 = vsel %vm221_vm2, %v219_v28, %v188_v23 }
 0x217   :  { %v206_v26 = vpop.xlane.xlu1 %205 }
 0x218   :  { %v227_v27 = vsel %vm226_vm3, %v222_v25, %v206_v26 }
 0x219   :  { %232 = vst.msk [vmem:[%s491_s3] sm:$0xff] %vm231_vm4, %v227_v27 }
 0x21b   :  { %v212_v30 = vpop.xlane.xlu1 %211 }
 0x21c   :  { %v229_v31 = vsel %vm226_vm3, %v224_v29, %v212_v30 }
 0x21d   :  { %234 = vst.msk [vmem:[%s491_s3 + $0x10] sm:$0xff] %vm231_vm4, %v229_v31 }

</bundles_post_ra>
